<compile_context>
chip_gen: v6e
topology: v6e:2x2x1
jax: 0.10.0
libtpu: 0.0.40
codegen_flags: <defaults>
</compile_context>

<pallas_src>
import jax
import jax.numpy as jnp
from jax.experimental import pallas as pl
from jax.experimental.pallas import tpu as pltpu

IN_FEATURES = 625
HIDDEN = 50
OUT = 10

HID_PAD = 64   # sublane-aligned hidden dim (zero-padded -> numerically exact)


def head_kernel(x_ref, w1_ref, b1_ref, w2_ref, b2_ref, o_ref):
    # fc1: cast the streamed f32 x tile to bf16 (halves MXU pushes, f32 acc).
    x = x_ref[...].astype(jnp.bfloat16)                               # (TB, 625)
    h = jnp.dot(x, w1_ref[...], preferred_element_type=jnp.float32)   # (TB, 64)
    h = jnp.maximum(h + b1_ref[...], 0.0)                             # bias + ReLU

    # TODO(synk): F.dropout is identity in eval mode; training-mode dropout
    # (matching torch's RNG) is not reproduced here.

    # fc2: tiny GEMM with bf16 operands, f32 accumulation, f32 bias.
    logits = jnp.dot(h.astype(jnp.bfloat16), w2_ref[...],
                     preferred_element_type=jnp.float32)              # (TB, 10)
    logits = logits + b2_ref[...]

    # numerically stable log_softmax over dim=1 (exp/log land on the EUP slot)
    m = jnp.max(logits, axis=1, keepdims=True)
    shifted = logits - m
    lse = jnp.log(jnp.sum(jnp.exp(shifted), axis=1, keepdims=True))
    o_ref[...] = (shifted - lse).astype(o_ref.dtype)


def _round_up(n, m):
    return ((n + m - 1) // m) * m


def _num_tensorcores():
    """Best-effort TensorCore-per-chip query (v7x=2); falls back to 1."""
    try:
        info = pltpu.get_tpu_info()
        for attr in ("num_cores", "core_count", "num_tensorcores",
                     "tensorcore_count", "num_cores_per_chip"):
            v = getattr(info, attr, None)
            if isinstance(v, int) and v > 0:
                return v
    except Exception:
        pass
    return 1


def pack_params(w1, b1, w2, b2):
    """One-time packing: pad HIDDEN 50->64 with zeros (exact), cast weights to bf16."""
    w1_p = jnp.zeros((IN_FEATURES, HID_PAD), jnp.bfloat16)
    w1_p = w1_p.at[:, :HIDDEN].set(w1.astype(jnp.bfloat16))
    b1_p = jnp.zeros((1, HID_PAD), jnp.float32)
    b1_p = b1_p.at[0, :HIDDEN].set(b1.reshape(-1).astype(jnp.float32))
    w2_p = jnp.zeros((HID_PAD, OUT), jnp.bfloat16)
    w2_p = w2_p.at[:HIDDEN, :].set(w2.astype(jnp.bfloat16))
    b2_p = b2.reshape(1, OUT).astype(jnp.float32)
    return w1_p, b1_p, w2_p, b2_p


def test_head_forward(x, packed_params, *, block_b=2048):
    """x: (B, 625) f32.  packed_params from pack_params()."""
    w1_p, b1_p, w2_p, b2_p = packed_params
    B = x.shape[0]
    n_tc = _num_tensorcores()

    # ---- batch tiling: balanced tiles (minimal padding), >= n_tc grid steps
    # when the batch is large enough to amortize per-step overhead (~0.35us).
    num_tiles = pl.cdiv(B, block_b)
    if num_tiles < n_tc and B >= n_tc * 512:
        num_tiles = n_tc

    if num_tiles <= 1:
        tb = B                      # single tile: full-array block is always legal
        num_tiles = 1
    else:
        tb = _round_up(pl.cdiv(B, num_tiles), 8)
        num_tiles = pl.cdiv(B, tb)

    b_pad = tb * num_tiles
    x_in = x if b_pad == B else jnp.pad(x, ((0, b_pad - B), (0, 0)))

    flops = 2 * b_pad * (IN_FEATURES * HID_PAD + HID_PAD * OUT)
    bytes_accessed = (
        b_pad * IN_FEATURES * 4                     # x stream (f32, read once)
        + IN_FEATURES * HID_PAD * 2                 # w1 bf16
        + HID_PAD * OUT * 2                         # w2 bf16
        + (HID_PAD + OUT) * 4                       # biases f32
        + b_pad * OUT * 4)                          # output f32

    out_padded = pl.pallas_call(
        head_kernel,
        out_shape=jax.ShapeDtypeStruct((b_pad, OUT), jnp.float32),
        grid_spec=pltpu.PrefetchScalarGridSpec(
            num_scalar_prefetch=0,
            grid=(num_tiles,),
            in_specs=[
                pl.BlockSpec((tb, IN_FEATURES), lambda i: (i, 0)),     # x stream
                pl.BlockSpec((IN_FEATURES, HID_PAD), lambda i: (0, 0)),  # w1 resident
                pl.BlockSpec((1, HID_PAD), lambda i: (0, 0)),            # b1 resident
                pl.BlockSpec((HID_PAD, OUT), lambda i: (0, 0)),          # w2 resident
                pl.BlockSpec((1, OUT), lambda i: (0, 0)),                # b2 resident
            ],
            out_specs=pl.BlockSpec((tb, OUT), lambda i: (i, 0)),
        ),
        compiler_params=pltpu.CompilerParams(
            dimension_semantics=("parallel",),
            vmem_limit_bytes=32 * 1024 * 1024),
        cost_estimate=pl.CostEstimate(
            flops=flops,
            transcendentals=b_pad * (OUT + 1),
            bytes_accessed=bytes_accessed),
    )(x_in, w1_p, b1_p, w2_p, b2_p)

    return out_padded[:B]


def reference_forward(x, w1, b1, w2, b2):
    h = jnp.maximum(x @ w1 + b1.reshape(1, -1), 0.0)
    logits = h @ w2 + b2.reshape(1, -1)
    return jax.nn.log_softmax(logits, axis=1)


def init_params(key):
    # PyTorch-style uniform init: U(-1/sqrt(fan_in), 1/sqrt(fan_in)).
    k1, k2, k3, k4 = jax.random.split(key, 4)
    bound1 = 1.0 / (IN_FEATURES ** 0.5)
    bound2 = 1.0 / (HIDDEN ** 0.5)
    # stored as (in, out) -> already transposed vs torch's (out, in)
    w1 = jax.random.uniform(k1, (IN_FEATURES, HIDDEN), jnp.float32, -bound1, bound1)
    b1 = jax.random.uniform(k2, (HIDDEN,), jnp.float32, -bound1, bound1)
    w2 = jax.random.uniform(k3, (HIDDEN, OUT), jnp.float32, -bound2, bound2)
    b2 = jax.random.uniform(k4, (OUT,), jnp.float32, -bound2, bound2)
    return w1, b1, w2, b2


if __name__ == "__main__":
    key = jax.random.PRNGKey(0)
    k_x, k_p = jax.random.split(key)

    B = 8
    x = jax.random.normal(k_x, (B, IN_FEATURES), jnp.float32)
    w1, b1, w2, b2 = init_params(k_p)

    packed = pack_params(w1, b1, w2, b2)          # one-time weight packing
    out = test_head_forward(x, packed)
    out = jax.block_until_ready(out)
    assert out.shape == (B, OUT)

    # sanity: rows of log_softmax sum to 1 in prob space
    probs_sum = jnp.sum(jnp.exp(out), axis=1)
    assert bool(jnp.all(jnp.abs(probs_sum - 1.0) < 1e-4))

    # compare against full-precision pure-JAX reference (bf16 matmul tolerance)
    ref = reference_forward(x, w1, b1, w2, b2)
    max_err = float(jnp.max(jnp.abs(out - ref)))
    assert max_err < 5e-2, f"max abs err vs reference too large: {max_err}"

    print("KERNEL_OK")
</pallas_src>

<mosaic_0001>
module attributes {stable_mosaic.version = 11 : i64} {
  func.func @head_kernel(%arg0: i32, %arg1: memref<8x625xf32, #tpu.memory_space<vmem>>, %arg2: memref<625x64xbf16, #tpu.memory_space<vmem>>, %arg3: memref<1x64xf32, #tpu.memory_space<vmem>>, %arg4: memref<64x10xbf16, #tpu.memory_space<vmem>>, %arg5: memref<1x10xf32, #tpu.memory_space<vmem>>, %arg6: memref<8x10xf32, #tpu.memory_space<vmem>>) attributes {dimension_semantics = [#tpu.dimension_semantics<parallel>], iteration_bounds = array<i64: 1>, scalar_prefetch = 0 : i64, scratch_operands = 0 : i64, tpu.core_type = #tpu.core_type<tc>, window_params = [{transform_indices = @transform_0, window_bounds = array<i64: 8, 625>}, {pipeline_mode = #tpu.pipeline_mode<synchronous>, transform_indices = @transform_1, window_bounds = array<i64: 625, 64>}, {pipeline_mode = #tpu.pipeline_mode<synchronous>, transform_indices = @transform_2, window_bounds = array<i64: 1, 64>}, {pipeline_mode = #tpu.pipeline_mode<synchronous>, transform_indices = @transform_3, window_bounds = array<i64: 64, 10>}, {pipeline_mode = #tpu.pipeline_mode<synchronous>, transform_indices = @transform_4, window_bounds = array<i64: 1, 10>}, {transform_indices = @transform_5, window_bounds = array<i64: 8, 10>}]} {
    %c0 = arith.constant 0 : index
    %c0_0 = arith.constant 0 : index
    %0 = vector.load %arg1[%c0, %c0_0] : memref<8x625xf32, #tpu.memory_space<vmem>>, vector<8x625xf32>
    %1 = arith.truncf %0 : vector<8x625xf32> to vector<8x625xbf16>
    %c0_1 = arith.constant 0 : index
    %c0_2 = arith.constant 0 : index
    %2 = vector.load %arg2[%c0_1, %c0_2] : memref<625x64xbf16, #tpu.memory_space<vmem>>, vector<625x64xbf16>
    %cst = arith.constant dense<0.000000e+00> : vector<8x64xf32>
    %3 = tpu.matmul %1, %2, %cst {dimension_numbers = #tpu.dot_dimension_numbers<[1], [0], [0], [1], [0, 0, 1, 1], [], []>} : vector<8x625xbf16>, vector<625x64xbf16>, vector<8x64xf32> -> vector<8x64xf32>
    %c0_3 = arith.constant 0 : index
    %c0_4 = arith.constant 0 : index
    %4 = vector.load %arg3[%c0_3, %c0_4] : memref<1x64xf32, #tpu.memory_space<vmem>>, vector<1x64xf32>
    %5 = vector.broadcast %4 : vector<1x64xf32> to vector<8x64xf32>
    %6 = arith.addf %3, %5 : vector<8x64xf32>
    %cst_5 = arith.constant 0.000000e+00 : f32
    %7 = vector.broadcast %cst_5 : f32 to vector<8x64xf32>
    %8 = arith.maximumf %6, %7 : vector<8x64xf32>
    %9 = arith.truncf %8 : vector<8x64xf32> to vector<8x64xbf16>
    %c0_6 = arith.constant 0 : index
    %c0_7 = arith.constant 0 : index
    %10 = vector.load %arg4[%c0_6, %c0_7] : memref<64x10xbf16, #tpu.memory_space<vmem>>, vector<64x10xbf16>
    %cst_8 = arith.constant dense<0.000000e+00> : vector<8x10xf32>
    %11 = tpu.matmul %9, %10, %cst_8 {dimension_numbers = #tpu.dot_dimension_numbers<[1], [0], [0], [1], [0, 0, 1, 1], [], []>} : vector<8x64xbf16>, vector<64x10xbf16>, vector<8x10xf32> -> vector<8x10xf32>
    %c0_9 = arith.constant 0 : index
    %c0_10 = arith.constant 0 : index
    %12 = vector.load %arg5[%c0_9, %c0_10] : memref<1x10xf32, #tpu.memory_space<vmem>>, vector<1x10xf32>
    %13 = vector.broadcast %12 : vector<1x10xf32> to vector<8x10xf32>
    %14 = arith.addf %11, %13 : vector<8x10xf32>
    %cst_11 = arith.constant dense<0xFF800000> : vector<8xf32>
    %15 = vector.multi_reduction <maximumf>, %14, %cst_11 [1] : vector<8x10xf32> to vector<8xf32>
    %16 = vector.shape_cast %15 : vector<8xf32> to vector<8x1xf32>
    %17 = vector.broadcast %16 : vector<8x1xf32> to vector<8x10xf32>
    %18 = arith.subf %14, %17 : vector<8x10xf32>
    %19 = math.exp %18 : vector<8x10xf32>
    %cst_12 = arith.constant dense<0.000000e+00> : vector<8xf32>
    %20 = vector.multi_reduction <add>, %19, %cst_12 [1] : vector<8x10xf32> to vector<8xf32>
    %21 = vector.shape_cast %20 : vector<8xf32> to vector<8x1xf32>
    %22 = math.log %21 : vector<8x1xf32>
    %23 = vector.broadcast %22 : vector<8x1xf32> to vector<8x10xf32>
    %24 = arith.subf %18, %23 : vector<8x10xf32>
    %c0_13 = arith.constant 0 : index
    %c0_14 = arith.constant 0 : index
    %25 = vector.load %arg6[%c0_13, %c0_14] : memref<8x10xf32, #tpu.memory_space<vmem>>, vector<8x10xf32>
    tpu.vector_store %arg6[%c0_13, %c0_14], %24 {strides = array<i32>} : memref<8x10xf32, #tpu.memory_space<vmem>>, vector<8x10xf32>,
    return
  }
  func.func @transform_0(%arg0: i32) -> (i32, i32) {
    %c0_i32 = arith.constant 0 : i32
    %c0_i32_0 = arith.constant 0 : i32
    return %arg0, %c0_i32 : i32, i32
  }
  func.func @transform_1(%arg0: i32) -> (i32, i32) {
    %c0_i32 = arith.constant 0 : i32
    %c0_i32_0 = arith.constant 0 : i32
    %c0_i32_1 = arith.constant 0 : i32
    return %c0_i32, %c0_i32_0 : i32, i32
  }
  func.func @transform_2(%arg0: i32) -> (i32, i32) {
    %c0_i32 = arith.constant 0 : i32
    %c0_i32_0 = arith.constant 0 : i32
    %c0_i32_1 = arith.constant 0 : i32
    return %c0_i32, %c0_i32_0 : i32, i32
  }
  func.func @transform_3(%arg0: i32) -> (i32, i32) {
    %c0_i32 = arith.constant 0 : i32
    %c0_i32_0 = arith.constant 0 : i32
    %c0_i32_1 = arith.constant 0 : i32
    return %c0_i32, %c0_i32_0 : i32, i32
  }
  func.func @transform_4(%arg0: i32) -> (i32, i32) {
    %c0_i32 = arith.constant 0 : i32
    %c0_i32_0 = arith.constant 0 : i32
    %c0_i32_1 = arith.constant 0 : i32
    return %c0_i32, %c0_i32_0 : i32, i32
  }
  func.func @transform_5(%arg0: i32) -> (i32, i32) {
    %c0_i32 = arith.constant 0 : i32
    %c0_i32_0 = arith.constant 0 : i32
    return %arg0, %c0_i32 : i32, i32
  }
}

</mosaic_0001>

<bundles_post_ra>
// kernel: tpu_custom_call.1
= control target key start
LH: loop header
LB: loop body
LE: loop exit
PB: predicated region body
PF: predicated region fallthrough
CT: control target
= control target key end

     0   :  { %vm359_vm0 = vcmask 1040384   ;;  %v810_v35 = vmov 0.0   ;;  %v811_v37 = vmov 0   ;;  %vm812_vm1 = vmmov 0   ;;  %s1003_s0 = inlined_call_operand.vmem [shape: f32[8,625], index: 0, kind: input, shape index: {}]   ;;  %s1004_s1 = inlined_call_operand.vmem [shape: bf16[625,64], index: 1, kind: input, shape index: {}]   ;;  %s1005_s2 = inlined_call_operand.vmem [shape: f32[1,64], index: 2, kind: input, shape index: {}]   ;;  %s1006_s3 = inlined_call_operand.vmem [shape: bf16[64,10], index: 3, kind: input, shape index: {}]   ;;  %s1007_s4 = inlined_call_operand.vmem [shape: f32[1,10], index: 4, kind: input, shape index: {}]   ;;  %s1008_s5 = inlined_call_operand.hbm [shape: f32[8,10], index: 5, kind: output, shape index: {}]  }
   0x1   :  { %v740_v0 = vld [vmem:[%s1004_s1 + $0x78] sm:$0xff]   ;;  %v744_v4 = vld [vmem:[%s1004_s1 + $0x70] sm:$0xff]   ;;  %v748_v8 = vld [vmem:[%s1004_s1 + $0x68] sm:$0xff]   ;;  %v361_v38 = vsel %vm359_vm0, 65535, %v811_v37 }
   0x2   :  { %v741_v1 = vld [vmem:[%s1004_s1 + $0x38] sm:$0xff]   ;;  %646 = vmatprep.subr.bf16.mxu0 %v740_v0  ;;  %v745_v5 = vld [vmem:[%s1004_s1 + $0x30] sm:$0xff]   ;;  %v749_v9 = vld [vmem:[%s1004_s1 + $0x28] sm:$0xff]  }
   0x3   :  { %v742_v2 = vld [vmem:[%s1004_s1 + $0xf8] sm:$0xff]   ;;  %647 = vmatpush3.bf16.msra.mxu0 %v741_v1  ;;  %v746_v6 = vld [vmem:[%s1004_s1 + $0xf0] sm:$0xff]   ;;  %v750_v10 = vld [vmem:[%s1004_s1 + $0xe8] sm:$0xff]  }
   0x4   :  { %v743_v3 = vld [vmem:[%s1004_s1 + $0xb8] sm:$0xff]   ;;  %668 = vmatprep.subr.bf16.mxu1 %v742_v2  ;;  %648 = vmatprep.subr.bf16.mxu0 %v744_v4  ;;  %v747_v7 = vld [vmem:[%s1004_s1 + $0xb0] sm:$0xff]   ;;  %v751_v11 = vld [vmem:[%s1004_s1 + $0xa8] sm:$0xff]  }
   0x5   :  { %669 = vmatpush3.bf16.msra.mxu1 %v743_v3  ;;  %v752_v12 = vld [vmem:[%s1004_s1 + $0x60] sm:$0xff]   ;;  %v756_v16 = vld [vmem:[%s1004_s1 + $0x58] sm:$0xff]   ;;  %v760_v20 = vld [vmem:[%s1004_s1 + $0x50] sm:$0xff]  }
   0x6   :  { %670 = vmatprep.subr.bf16.mxu1 %v746_v6  ;;  %v753_v13 = vld [vmem:[%s1004_s1 + $0x20] sm:$0xff]   ;;  %v757_v17 = vld [vmem:[%s1004_s1 + $0x18] sm:$0xff]   ;;  %v761_v21 = vld [vmem:[%s1004_s1 + $0x10] sm:$0xff]  }
   0x7   :  { %649 = vmatpush3.bf16.msra.mxu0 %v745_v5  ;;  %v754_v14 = vld [vmem:[%s1004_s1 + $0xe0] sm:$0xff]   ;;  %v758_v18 = vld [vmem:[%s1004_s1 + $0xd8] sm:$0xff]   ;;  %v762_v22 = vld [vmem:[%s1004_s1 + $0xd0] sm:$0xff]  }
   0x8   :  { %650 = vmatprep.subr.bf16.mxu0 %v748_v8  ;;  %v755_v15 = vld [vmem:[%s1004_s1 + $0xa0] sm:$0xff]   ;;  %v759_v19 = vld [vmem:[%s1004_s1 + $0x98] sm:$0xff]   ;;  %v763_v23 = vld [vmem:[%s1004_s1 + $0x90] sm:$0xff]  }
   0x9   :  { %671 = vmatpush3.bf16.msra.mxu1 %v747_v7  ;;  %v764_v24 = vld [vmem:[%s1004_s1 + $0x48] sm:$0xff]   ;;  %v768_v28 = vld [vmem:[%s1004_s1 + $0x40] sm:$0xff]   ;;  %v25_v36 = vld [vmem:[%s1003_s0 + $0x18] sm:$0xff] }
   0xa   :  { %672 = vmatprep.subr.bf16.mxu1 %v750_v10  ;;  %v765_v25 = vld [vmem:[%s1004_s1 + $0x8] sm:$0xff]   ;;  %v769_v29 = vld [vmem:[%s1004_s1] sm:$0xff]   ;;  %v30_v40 = vpack.c.bf16 %v25_v36, %v25_v36  ;;  %v772_v41 = vld [vmem:[%s1004_s1 + $0x138] ss:$0 sps:$4 sm:$0x11]  }
   0xb   :  { %651 = vmatpush3.bf16.msra.mxu0 %v749_v9  ;;  %v766_v26 = vld [vmem:[%s1004_s1 + $0xc8] sm:$0xff]   ;;  %v770_v30 = vld [vmem:[%s1004_s1 + $0xc0] sm:$0xff]   ;;  %v24_v42 = vld [vmem:[%s1003_s0 + $0x10] sm:$0xff]  ;;  %v363_v44 = vand.u32 %v772_v41, %v361_v38 }
   0xc   :  { %652 = vmatprep.subr.bf16.mxu0 %v752_v12  ;;  %v767_v27 = vld [vmem:[%s1004_s1 + $0x88] sm:$0xff]   ;;  %v771_v33 = vld [vmem:[%s1004_s1 + $0x80] sm:$0xff]   ;;  %v29_v43 = vpack.c.bf16 %v24_v42, %v24_v42  ;;  %437 = vmatprep.mubr.bf16.mxu1 %v30_v40  ;;  %v773_v45 = vld [vmem:[%s1004_s1 + $0x130] sm:$0xff]  }
   0xd   :  { %673 = vmatpush3.bf16.msra.mxu1 %v751_v11  ;;  %v23_v31 = vld [vmem:[%s1003_s0 + $0x8] sm:$0xff]  ;;  %v22_v34 = vld [vmem:[%s1003_s0] sm:$0xff] }
   0xe   :  { %674 = vmatprep.subr.bf16.mxu1 %v754_v14  ;;  %v28_v32 = vpack.c.bf16 %v23_v31, %v23_v31  ;;  %v27_v39 = vpack.c.bf16 %v22_v34, %v22_v34  ;;  %v774_v46 = vld [vmem:[%s1004_s1 + $0x128] sm:$0xff]  }
   0xf   :  { %653 = vmatpush3.bf16.msra.mxu0 %v753_v13 }
  0x10   :  { %654 = vmatprep.subr.bf16.mxu0 %v756_v16  ;;  %397 = vmatprep.mubr.bf16.mxu0 %v28_v32 }
  0x11   :  { %675 = vmatpush3.bf16.msra.mxu1 %v755_v15 }
  0x12   :  { %676 = vmatprep.subr.bf16.mxu1 %v758_v18 }
  0x13   :  { %655 = vmatpush3.bf16.msra.mxu0 %v757_v17 }
  0x14   :  { %656 = vmatprep.subr.bf16.mxu0 %v760_v20 }
  0x15   :  { %677 = vmatpush3.bf16.msra.mxu1 %v759_v19 }
  0x16   :  { %678 = vmatprep.subr.bf16.mxu1 %v762_v22 }
  0x17   :  { %657 = vmatpush3.bf16.msra.mxu0 %v761_v21 }
  0x18   :  { %658 = vmatprep.subr.bf16.mxu0 %v764_v24 }
  0x19   :  { %679 = vmatpush3.bf16.msra.mxu1 %v763_v23 }
  0x1a   :  { %680 = vmatprep.subr.bf16.mxu1 %v766_v26 }
  0x1b   :  { %659 = vmatpush3.bf16.msra.mxu0 %v765_v25 }
  0x1c   :  { %660 = vmatprep.subr.bf16.mxu0 %v768_v28 }
  0x1d   :  { %681 = vmatpush3.bf16.msra.mxu1 %v767_v27 }
  0x1e   :  { %682 = vmatprep.subr.bf16.mxu1 %v770_v30 }
  0x1f   :  { %661 = vmatpush3.bf16.msra.mxu0 %v769_v29 }
  0x20   :  { %704 = vmatprep.subr.bf16.mxu0 %v810_v35 }
  0x21   :  { %683 = vmatpush3.bf16.msra.mxu1 %v771_v33 }
  0x22   :  { %398 = vmatmul.mubr.bf16.vlgmr.msra.gmra.mxu0 %v27_v39  ;;  %724 = vmatprep.subr.bf16.mxu1 %v810_v35 }
  0x23   :  { %720 = vmatprep.mubr.msk.bf16.mxu0 %vm812_vm1, %v810_v35  ;;  %705 = vmatpush3.bf16.msra.mxu0 %v363_v44 }
  0x24   :  { %438 = vmatmul.mubr.bf16.vlgmr.msra.gmra.mxu1 %v29_v43  ;;  %706 = vmatprep.subr.bf16.mxu0 %v810_v35 }
  0x25   :  { %732 = vmatprep.mubr.msk.bf16.mxu1 %vm812_vm1, %v810_v35 }
  0x27   :  { %707 = vmatpush3.bf16.msra.mxu0 %v773_v45 }
  0x28   :  { %708 = vmatprep.subr.bf16.mxu0 %v810_v35 }
  0x29   :  { %10 = vsyncpa [#allocation3], 0  ;;  %v775_v47 = vld [vmem:[%s1004_s1 + $0x120] sm:$0xff]   ;;  %v776_v48 = vld [vmem:[%s1004_s1 + $0x118] sm:$0xff]   ;;  %vm355_vm2 = vcmask 924672   ;;  %vm526_vm3 = vcmask 523264  }
  0x2a   :  { %v777_v49 = vld [vmem:[%s1004_s1 + $0x110] sm:$0xff]   ;;  %v778_v50 = vld [vmem:[%s1004_s1 + $0x108] sm:$0xff]   ;;  %v779_v51 = vld [vmem:[%s1004_s1 + $0x100] sm:$0xff]   ;;  %vm570_vm4 = vcmask 80896  }
  0x2b   :  { %709 = vmatpush3.bf16.msra.mxu0 %v774_v46  ;;  %v26_v52 = vld [vmem:[%s1003_s0 + $0x20] sm:$0xff]  ;;  %v780_v54 = vld [vmem:[%s1006_s3 + $0x18] sm:$0xff]   ;;  %v781_v55 = vld [vmem:[%s1006_s3 + $0x10] sm:$0xff]  }
  0x2c   :  { %710 = vmatprep.subr.bf16.mxu0 %v810_v35  ;;  %v31_v53 = vpack.c.bf16 %v26_v52, %v26_v52  ;;  %725 = vmatpush3.bf16.msra.mxu1 %v780_v54  ;;  %v782_v56 = vld [vmem:[%s1006_s3 + $0x8] sm:$0xff]   ;;  %v783_v57 = vld [vmem:[%s1006_s3] sm:$0xff]  }
  0x2d   :  { %726 = vmatprep.subr.bf16.mxu1 %v810_v35  ;;  %v598_v3 = vld [vmem:[%s1005_s2] ss:$0 sm:$0xff]  ;;  %s813_s2 = smov [#allocation2]  }
  0x2e   :  { %v640_v14 = vld [vmem:[%s1007_s4] ss:$0 sm:$0xff]  ;;  %s590_s4 = sshll.u32 %s813_s2, 4  ;;  %s591_s4 = int_to_ptr.vmem [resolvable:$true] %s590_s4 }
  0x2f   :  { %711 = vmatpush3.bf16.msra.mxu0 %v775_v47  ;;  %s788_s17 = scalar_lea.vmem %s591_s4, 128  ;;  %p793_p1 = scmp.lt.s32.totalorder %s591_s4, %s591_s4 }
  0x30   :  { %712 = vmatprep.subr.bf16.mxu0 %v810_v35  ;;  %727 = vmatpush3.bf16.msra.mxu1 %v781_v55  ;;  %p789_p0 = scmp.ne.s32.totalorder %s591_s4, %s788_s17  ;;  %p794_p2 = scmp.lt.s32.totalorder %s788_s17, %s788_s17 }
  0x31   :  { %728 = vmatprep.subr.bf16.mxu1 %v810_v35 }
  0x32   :  { %p795_p3 = por %p794_p2, %p793_p1 }
  0x33   :  { %713 = vmatpush3.bf16.msra.mxu0 %v776_v48 }
  0x34   :  { %714 = vmatprep.subr.bf16.mxu0 %v810_v35  ;;  %729 = vmatpush3.bf16.msra.mxu1 %v782_v56  ;;  %p796_p4 = pnand %p795_p3, %p789_p0 }
  0x35   :  { %730 = vmatprep.subr.bf16.mxu1 %v810_v35 }
  0x37   :  { %715 = vmatpush3.bf16.msra.mxu0 %v777_v49 }
  0x38   :  { %716 = vmatprep.subr.bf16.mxu0 %v810_v35  ;;  %731 = vmatpush3.bf16.msra.mxu1 %v783_v57 }
  0x3b   :  { %717 = vmatpush3.bf16.msra.mxu0 %v778_v50 }
  0x3c   :  { %718 = vmatprep.subr.bf16.mxu0 %v810_v35 }
  0x3f   :  { %719 = vmatpush3.bf16.msra.mxu0 %v779_v51 }
  0x42   :  { %721 = vmatmul.mubr.msk.bf16.vlgmr.msra.gmra.mxu0 %vm355_vm2, %v31_v53 }
  0xe2   :  { %v662_v58 = vpop.f32.mrf.mxu0 }
  0xe4   :  { %v663_v59 = vpop.f32.mrf.mxu0  ;;  %v684_v60 = vpop.f32.mrf.mxu1 }
  0xe5   :  { %v664_v2 = vadd.f32 %v663_v59, %v662_v58 }
  0xe6   :  { %v665_v61 = vpop.f32.mrf.mxu0  ;;  %v685_v62 = vpop.f32.mrf.mxu1 }
  0xe7   :  { %v400_v4 = vadd.f32 %v664_v2, %v598_v3  ;;  %v686_v5 = vadd.f32 %v685_v62, %v684_v60 }
  0xe8   :  { %v666_v63 = vpop.f32.mrf.mxu0  ;;  %v687_v0 = vpop.f32.mrf.mxu1 }
  0xe9   :  { %v440_v6 = vadd.f32 %v686_v5, %v400_v4 }
  0xea   :  { %v688_v1 = vpop.f32.mrf.mxu1 }
 0x102   :  { %v479_v7 = vpop.f32.mrf.mxu0 }
 0x103   :  { %v480_v8 = vadd.f32 %v479_v7, %v440_v6 }
 0x104   :  { %v722_v9 = vpop.f32.mrf.mxu0 }
 0x105   :  { %v485_v10 = vmax.f32 %v480_v8, 0.0 }
 0x106   :  { %v482_v11 = vpop.f32.mrf.mxu0 }
 0x107   :  { %v486_v12 = vpack.c.bf16 %v485_v10, %v485_v10 }
 0x108   :  { %v723_v13 = vpop.f32.mrf.mxu0 }
 0x109   :  { %733 = vmatmul.mubr.msk.bf16.vlgmr.msra.gmra.mxu1 %vm526_vm3, %v486_v12 }
 0x1c9   :  { %v564_v15 = vpop.f32.mrf.mxu1 }
 0x1ca   :  { %v565_v16 = vadd.f32 %v640_v14, %v564_v15 }
 0x1cb   :  { %v734_v17 = vpop.f32.mrf.mxu1 }
 0x1cc   :  { %v571_v18 = vsel %vm570_vm4, %v565_v16, -inf }
 0x1cd   :  { %572 = vmax.xlane.f32.xlu0 %v571_v18  ;;  %v567_v19 = vpop.f32.mrf.mxu1 }
 0x1cf   :  { %v735_v20 = vpop.f32.mrf.mxu1 }
 0x256   :  { %v573_v21 = vpop.xlane.xlu0 %572 }
 0x257   :  { %v574_v22 = vsub.f32 %v565_v16, %v573_v21 }
 0x259   :  { %v575_v23 = vmul.f32 1.442695, %v574_v22 }
 0x25b   :  { %784 = vpow2.f32 %v575_v23 }
 0x268   :  { %v785_v24 = vpop.eup %784 }
 0x269   :  { %v577_v25 = vsel %vm570_vm4, %v785_v24, 0.0 }
 0x26a   :  { %578 = vadd.xlane.f32.xlu0 %v577_v25 }
 0x2f3   :  { %v579_v26 = vpop.xlane.xlu0 %578 }
 0x2f4   :  { %786 = vlog2.f32 %v579_v26 }
 0x301   :  { %v787_v27 = vpop.eup %786 }
 0x302   :  { %v581_v28 = vmul.f32 0.6931472, %v787_v27 }
 0x304   :  { %v582_v29 = vsub.f32 %v574_v22, %v581_v28 }
 0x306   :  { %583 = vst.msk [vmem:[#allocation2] sm:$0xff] %vm570_vm4, %v582_v29 }
 0x307   :  { %799 = shalt.err (!%p796_p4)
}
 0x308   :  { %593 = dma.vmem_to_hbm [thread:$0]  %s591_s4, 128, %s1008_s5, [#allocation3]  }
 0x309   :  { %808 = dma.done.wait [#allocation3], 128  }
 0x30a   :  { %809 = vsyncadd [#allocation3], 4294967168 }
 0x30b   :  { %597 = vsyncpa [#allocation3], 1 }

</bundles_post_ra>
